<compile_context>
chip_gen: v5e
topology: v5e:2x2
jax: 0.10.0
libtpu: 0.0.40
codegen_flags: <defaults>
</compile_context>

<pallas_src>
import functools
import math

import jax
import jax.numpy as jnp
from jax import lax
from jax.experimental import pallas as pl
from jax.experimental.pallas import tpu as pltpu


def _ln_plain_kernel(x_ref, a_ref, b_ref, o_ref, *, eps, inv_n, inv_nm1):
    # x_ref: (tile_rows, feat) native dtype; a_ref / b_ref: (1, feat) f32 (resident).
    x = x_ref[...].astype(jnp.float32)
    mean = jnp.sum(x, axis=-1, keepdims=True) * inv_n          # XLU reduce (free slot)
    d = x - mean
    var = jnp.sum(d * d, axis=-1, keepdims=True) * inv_nm1     # unbiased variance
    inv = pl.reciprocal(jnp.sqrt(var) + eps, approx=False)     # EUP, per-row
    o_ref[...] = (a_ref[...] * (d * inv) + b_ref[...]).astype(o_ref.dtype)


def _ln_packed_kernel(x_ref, a_ref, b_ref, seg_ref, o_ref, *, eps, inv_n, inv_nm1):
    # Lane-packed path: each physical row holds k original rows of `feat`
    # features (k * feat == 128 lanes).  seg_ref is a (P, P) 0/1 block-diagonal
    # matrix; x @ seg gives each lane the sum over its own segment, already
    # broadcast.  HIGHEST precision keeps f32 accuracy through the MXU
    # (MXU is idle -> this is free for an HBM-bound kernel).
    x = x_ref[...].astype(jnp.float32)                         # (tile_rows, P)
    seg = seg_ref[...]                                         # (P, P) f32
    mean = jnp.dot(x, seg, preferred_element_type=jnp.float32,
                   precision=lax.Precision.HIGHEST) * inv_n
    d = x - mean
    var = jnp.dot(d * d, seg, preferred_element_type=jnp.float32,
                  precision=lax.Precision.HIGHEST) * inv_nm1
    inv = pl.reciprocal(jnp.sqrt(var) + eps, approx=False)
    o_ref[...] = (a_ref[...] * (d * inv) + b_ref[...]).astype(o_ref.dtype)


def _round_up(x, m):
    return ((x + m - 1) // m) * m


def layer_norm(x, a_2, b_2, eps=1e-6, tile_rows=None):
    """x: (..., features); a_2, b_2: (features,).  Matches the PyTorch module."""
    orig_shape = x.shape
    orig_dtype = x.dtype
    feat = orig_shape[-1]
    rows = int(math.prod(orig_shape[:-1])) if len(orig_shape) > 1 else 1

    # Parameters in f32 once (no per-step cast in the kernel).
    a2 = jnp.asarray(a_2, dtype=jnp.float32).reshape(1, feat)
    b2 = jnp.asarray(b_2, dtype=jnp.float32).reshape(1, feat)

    # Lane packing: fold k = 128 // feat original rows into one 128-lane row
    # whenever feat divides 128.  Pure row-major reshape -> no data movement.
    k = 1
    if 2 <= feat < 128 and 128 % feat == 0 and rows % (128 // feat) == 0:
        k = 128 // feat
    packed_feat = k * feat
    packed_rows = rows // k
    x2 = x.reshape(packed_rows, packed_feat)
    if k > 1:
        a2 = jnp.tile(a2, (1, k))
        b2 = jnp.tile(b2, (1, k))

    itemsize = jnp.dtype(orig_dtype).itemsize
    sublane = max(8, 32 // itemsize)        # 8 for f32, 16 for bf16, 32 for int8/fp8

    # Physical VMEM per TensorCore: 128 MiB on v5e/v6e, 64 MiB on v7x.
    try:
        vmem_bytes = int(pltpu.get_tpu_info().vmem_capacity_bytes)
    except Exception:
        vmem_bytes = 64 << 20               # conservative (v7x) fallback

    # Per-row VMEM footprint of one tile:
    #   4 x native   : input + output pipeline buffers, each double-buffered
    #   4 x f32      : full-tile f32 intermediates (x, d, mean/inv, out) kept
    #                  live by the per-row reduction
    bytes_per_row = packed_feat * itemsize
    footprint_per_row = 4 * bytes_per_row + 4 * packed_feat * 4

    if tile_rows is None:
        budget = vmem_bytes // 2            # keep half of VMEM as headroom
        tile_rows = budget // footprint_per_row
    tile_rows = max(sublane, (tile_rows // sublane) * sublane)
    tile_rows = min(tile_rows, max(sublane, _round_up(packed_rows, sublane)))

    grid = (pl.cdiv(packed_rows, tile_rows),)   # trailing partial block handled by Pallas

    resident_bytes = 2 * packed_feat * 4 + (packed_feat * packed_feat * 4 if k > 1 else 0)
    needed = tile_rows * footprint_per_row + 2 * resident_bytes + (2 << 20)
    vmem_limit = int(min(max(needed, 16 << 20), (vmem_bytes * 3) // 4))

    inv_n = 1.0 / feat
    # NOTE: unbiased std divides by (feat - 1); feat == 1 is guarded here
    # (torch itself returns NaN for std of a single element).
    inv_nm1 = 1.0 / max(feat - 1, 1)

    x_spec = pl.BlockSpec((tile_rows, packed_feat), lambda i: (i, 0))
    vec_spec = pl.BlockSpec((1, packed_feat), lambda i: (0, 0))

    if k > 1:
        # 0/1 block-diagonal segment-sum matrix (resident, 64 KiB for P=128).
        lane = jnp.arange(packed_feat)
        seg = (lane[:, None] // feat == lane[None, :] // feat).astype(jnp.float32)
        kernel = functools.partial(_ln_packed_kernel, eps=float(eps),
                                   inv_n=inv_n, inv_nm1=inv_nm1)
        args = (x2, a2, b2, seg)
        in_specs = [x_spec, vec_spec, vec_spec,
                    pl.BlockSpec((packed_feat, packed_feat), lambda i: (0, 0))]
    else:
        kernel = functools.partial(_ln_plain_kernel, eps=float(eps),
                                   inv_n=inv_n, inv_nm1=inv_nm1)
        args = (x2, a2, b2)
        in_specs = [x_spec, vec_spec, vec_spec]

    out = pl.pallas_call(
        kernel,
        out_shape=jax.ShapeDtypeStruct((packed_rows, packed_feat), orig_dtype),
        grid_spec=pltpu.PrefetchScalarGridSpec(
            num_scalar_prefetch=0,
            grid=grid,
            in_specs=in_specs,
            out_specs=pl.BlockSpec((tile_rows, packed_feat), lambda i: (i, 0)),
        ),
        compiler_params=pltpu.CompilerParams(
            dimension_semantics=("parallel",),   # no-op on single-TC, shards on v7x
            vmem_limit_bytes=vmem_limit,
        ),
    )(*args)

    return out.reshape(orig_shape)


if __name__ == "__main__":
    key = jax.random.PRNGKey(0)
    batch, seq, hidden = 2, 8, 32

    x = jax.random.normal(key, (batch, seq, hidden), dtype=jnp.float32)

    # Parameters exactly as in the module's __init__ (deterministic).
    a_2 = jnp.ones((hidden,), dtype=jnp.float32)
    b_2 = jnp.zeros((hidden,), dtype=jnp.float32)

    y = jax.block_until_ready(layer_norm(x, a_2, b_2, eps=1e-6))

    # Pure-JAX reference (unbiased std, eps added to std) — matches the
    # PyTorch module's forward.
    mean = jnp.mean(x, axis=-1, keepdims=True)
    std = jnp.sqrt(jnp.sum((x - mean) ** 2, axis=-1, keepdims=True) / (hidden - 1))
    y_ref = a_2 * (x - mean) / (std + 1e-6) + b_2

    assert jnp.allclose(y, y_ref, atol=1e-5, rtol=1e-5), "mismatch vs reference"
    print("KERNEL_OK")
</pallas_src>

<mosaic_0001>
module attributes {stable_mosaic.version = 11 : i64} {
  func.func @_ln_packed_kernel(%arg0: i32, %arg1: memref<8x128xf32, #tpu.memory_space<vmem>>, %arg2: memref<1x128xf32, #tpu.memory_space<vmem>>, %arg3: memref<1x128xf32, #tpu.memory_space<vmem>>, %arg4: memref<128x128xf32, #tpu.memory_space<vmem>>, %arg5: memref<8x128xf32, #tpu.memory_space<vmem>>) attributes {dimension_semantics = [#tpu.dimension_semantics<parallel>], iteration_bounds = array<i64: 1>, scalar_prefetch = 0 : i64, scratch_operands = 0 : i64, tpu.core_type = #tpu.core_type<tc>, window_params = [{transform_indices = @transform_0, window_bounds = array<i64: 8, 128>}, {pipeline_mode = #tpu.pipeline_mode<synchronous>, transform_indices = @transform_1, window_bounds = array<i64: 1, 128>}, {pipeline_mode = #tpu.pipeline_mode<synchronous>, transform_indices = @transform_2, window_bounds = array<i64: 1, 128>}, {pipeline_mode = #tpu.pipeline_mode<synchronous>, transform_indices = @transform_3, window_bounds = array<i64: 128, 128>}, {transform_indices = @transform_4, window_bounds = array<i64: 8, 128>}]} {
    %c0 = arith.constant 0 : index
    %c0_0 = arith.constant 0 : index
    %0 = vector.load %arg1[%c0, %c0_0] : memref<8x128xf32, #tpu.memory_space<vmem>>, vector<8x128xf32>
    %c0_1 = arith.constant 0 : index
    %c0_2 = arith.constant 0 : index
    %1 = vector.load %arg4[%c0_1, %c0_2] : memref<128x128xf32, #tpu.memory_space<vmem>>, vector<128x128xf32>
    %cst = arith.constant dense<0.000000e+00> : vector<8x128xf32>
    %2 = tpu.matmul %0, %1, %cst {dimension_numbers = #tpu.dot_dimension_numbers<[1], [0], [0], [1], [0, 0, 1, 1], [], []>, precision = #tpu.contract_precision<fp32>} : vector<8x128xf32>, vector<128x128xf32>, vector<8x128xf32> -> vector<8x128xf32>
    %cst_3 = arith.constant 3.125000e-02 : f32
    %3 = vector.broadcast %cst_3 : f32 to vector<8x128xf32>
    %4 = arith.mulf %2, %3 : vector<8x128xf32>
    %5 = arith.subf %0, %4 : vector<8x128xf32>
    %6 = arith.mulf %5, %5 : vector<8x128xf32>
    %cst_4 = arith.constant dense<0.000000e+00> : vector<8x128xf32>
    %7 = tpu.matmul %6, %1, %cst_4 {dimension_numbers = #tpu.dot_dimension_numbers<[1], [0], [0], [1], [0, 0, 1, 1], [], []>, precision = #tpu.contract_precision<fp32>} : vector<8x128xf32>, vector<128x128xf32>, vector<8x128xf32> -> vector<8x128xf32>
    %cst_5 = arith.constant 0.0322580636 : f32
    %8 = vector.broadcast %cst_5 : f32 to vector<8x128xf32>
    %9 = arith.mulf %7, %8 : vector<8x128xf32>
    %10 = math.sqrt %9 : vector<8x128xf32>
    %cst_6 = arith.constant 9.99999997E-7 : f32
    %11 = vector.broadcast %cst_6 : f32 to vector<8x128xf32>
    %12 = arith.addf %10, %11 : vector<8x128xf32>
    %13 = tpu.reciprocal %12 : vector<8x128xf32> -> vector<8x128xf32>
    %c0_7 = arith.constant 0 : index
    %c0_8 = arith.constant 0 : index
    %14 = vector.load %arg2[%c0_7, %c0_8] : memref<1x128xf32, #tpu.memory_space<vmem>>, vector<1x128xf32>
    %15 = arith.mulf %5, %13 : vector<8x128xf32>
    %16 = vector.broadcast %14 : vector<1x128xf32> to vector<8x128xf32>
    %17 = arith.mulf %16, %15 : vector<8x128xf32>
    %c0_9 = arith.constant 0 : index
    %c0_10 = arith.constant 0 : index
    %18 = vector.load %arg3[%c0_9, %c0_10] : memref<1x128xf32, #tpu.memory_space<vmem>>, vector<1x128xf32>
    %19 = vector.broadcast %18 : vector<1x128xf32> to vector<8x128xf32>
    %20 = arith.addf %17, %19 : vector<8x128xf32>
    %c0_11 = arith.constant 0 : index
    %c0_12 = arith.constant 0 : index
    %21 = vector.load %arg5[%c0_11, %c0_12] : memref<8x128xf32, #tpu.memory_space<vmem>>, vector<8x128xf32>
    tpu.vector_store %arg5[%c0_11, %c0_12], %20 {strides = array<i32>} : memref<8x128xf32, #tpu.memory_space<vmem>>, vector<8x128xf32>,
    return
  }
  func.func @transform_0(%arg0: i32) -> (i32, i32) {
    %c0_i32 = arith.constant 0 : i32
    %c0_i32_0 = arith.constant 0 : i32
    return %arg0, %c0_i32 : i32, i32
  }
  func.func @transform_1(%arg0: i32) -> (i32, i32) {
    %c0_i32 = arith.constant 0 : i32
    %c0_i32_0 = arith.constant 0 : i32
    %c0_i32_1 = arith.constant 0 : i32
    return %c0_i32, %c0_i32_0 : i32, i32
  }
  func.func @transform_2(%arg0: i32) -> (i32, i32) {
    %c0_i32 = arith.constant 0 : i32
    %c0_i32_0 = arith.constant 0 : i32
    %c0_i32_1 = arith.constant 0 : i32
    return %c0_i32, %c0_i32_0 : i32, i32
  }
  func.func @transform_3(%arg0: i32) -> (i32, i32) {
    %c0_i32 = arith.constant 0 : i32
    %c0_i32_0 = arith.constant 0 : i32
    %c0_i32_1 = arith.constant 0 : i32
    return %c0_i32, %c0_i32_0 : i32, i32
  }
  func.func @transform_4(%arg0: i32) -> (i32, i32) {
    %c0_i32 = arith.constant 0 : i32
    %c0_i32_0 = arith.constant 0 : i32
    return %arg0, %c0_i32 : i32, i32
  }
}

</mosaic_0001>

<bundles_post_ra>
// kernel: tpu_custom_call.1
= control target key start
LH: loop header
LB: loop body
LE: loop exit
PB: predicated region body
PF: predicated region fallthrough
CT: control target
= control target key end

     0   :  { %9 = vsyncpa [#allocation3], 0  ;;  %s1390_s0 = inlined_call_operand.hbm [shape: f32[4,128], index: 0, kind: input, shape index: {}]   ;;  %s1391_s1 = inlined_call_operand.hbm [shape: f32[1,128], index: 1, kind: input, shape index: {}]   ;;  %s1392_s2 = inlined_call_operand.vmem [shape: f32[1,128], index: 2, kind: input, shape index: {}]   ;;  %s1393_s3 = inlined_call_operand.hbm [shape: f32[128,128], index: 3, kind: input, shape index: {}]   ;;  %s1394_s4 = inlined_call_operand.hbm [shape: f32[4,128], index: 4, kind: output, shape index: {}]  }
   0x1   :  { %10 = vsyncpa [#allocation6], 0 }
   0x2   :  { %11 = vsyncpa [#allocation4], 0  ;;  %s30_s17 = sshll.u32 %s1391_s1, 4  ;;  %s31_s17 = int_to_ptr.hbm [resolvable:$true] %s30_s17 }
   0x3   :  { %15 = vsyncadd [#allocation3], 64  ;;  %s941_s18 = smov [#allocation5]   ;;  %s16_s22 = sshll.u32 %s1390_s0, 4  ;;  %s17_s22 = int_to_ptr.hbm [resolvable:$true] %s16_s22 }
   0x4   :  { %s32_s19 = sshll.u32 %s941_s18, 4  ;;  %s942_s23 = smov [#allocation2]   ;;  %s33_s19 = int_to_ptr.vmem [resolvable:$true] %s32_s19 }
   0x5   :  { %35 = dma.hbm_to_vmem [thread:$0]  %s31_s17, 16, %s33_s19, [#allocation6]  }
   0x6   :  { %s18_s24 = sshll.u32 %s942_s23, 4  ;;  %s943_s25 = smov 64   ;;  %s19_s24 = int_to_ptr.vmem [resolvable:$true] %s18_s24 }
   0x7   :  { %s944_s26 = smov 4   ;;  %s42_s28 = sshll.u32 %s1393_s3, 4  ;;  %s43_s28 = int_to_ptr.hbm [resolvable:$true] %s42_s28 }
   0x8   :  { %24 = dma.hbm_to_vmem [thread:$0]  %s17_s22, 64, %s19_s24, [#allocation3], %s943_s25, %s943_s25, %s944_s26  }
   0x9   :  { %s945_s29 = smov [#allocation7]   ;;  %s946_s0 = smov 128  }
   0xa   :  { %s44_s30 = sshll.u32 %s945_s29, 4  ;;  %s947_s5 = smov 8   ;;  %s45_s30 = int_to_ptr.vmem [resolvable:$true] %s44_s30 }
   0xb   :  { %50 = dma.hbm_to_vmem [thread:$0]  %s43_s28, 2048, %s45_s30, [#allocation6], %s946_s0, %s946_s0, %s947_s5  }
   0xc   :  { %935 = dma.done.wait [#allocation3], 128  }
   0xd   :  { %936 = vsyncadd [#allocation3], 4294967168 }
   0xe   :  { %937 = dma.done.wait [#allocation6], 2064  }
   0xf   :  { %938 = vsyncadd [#allocation6], 4294965232  ;;  %v79_v0 = vld [vmem:[#allocation7 + $0x78] sm:$0xff]  ;;  %v78_v1 = vld [vmem:[#allocation7 + $0x70] sm:$0xff] }
  0x10   :  { %v77_v2 = vld [vmem:[#allocation7 + $0x68] sm:$0xff]  ;;  %v986_v3 = vand.u32 4294901760, %v79_v0  ;;  %v988_v4 = vand.u32 4294901760, %v78_v1  ;;  %v76_v6 = vld [vmem:[#allocation7 + $0x60] sm:$0xff]  ;;  %v75_v7 = vld [vmem:[#allocation7 + $0x58] sm:$0xff] }
  0x11   :  { %v990_v5 = vand.u32 4294901760, %v77_v2  ;;  %v74_v8 = vld [vmem:[#allocation7 + $0x50] sm:$0xff]  ;;  %v992_v9 = vand.u32 4294901760, %v76_v6  ;;  %v994_v10 = vand.u32 4294901760, %v75_v7  ;;  %v73_v12 = vld [vmem:[#allocation7 + $0x48] sm:$0xff]  ;;  %v72_v13 = vld [vmem:[#allocation7 + $0x40] sm:$0xff] }
  0x12   :  { %v996_v11 = vand.u32 4294901760, %v74_v8  ;;  %81 = vmatpush.msra.mxu0 %v986_v3  ;;  %v1000_v14 = vsub.f32 %v79_v0, %v986_v3  ;;  %v1003_v15 = vsub.f32 %v78_v1, %v988_v4  ;;  %v1008_v17 = vand.u32 4294901760, %v73_v12  ;;  %v71_v18 = vld [vmem:[#allocation7 + $0x38] sm:$0xff]  ;;  %277 = vmatpush.msra.mxu3 %v986_v3  ;;  %v70_v26 = vld [vmem:[#allocation7 + $0x30] sm:$0xff]  ;;  %v69_v36 = vld [vmem:[#allocation7 + $0x28] sm:$0xff] }
  0x13   :  { %v1006_v16 = vsub.f32 %v77_v2, %v990_v5  ;;  %v1012_v19 = vsub.f32 %v76_v6, %v992_v9  ;;  %v1015_v20 = vsub.f32 %v75_v7, %v994_v10  ;;  %v1030_v25 = vand.u32 4294901760, %v72_v13  ;;  %v68_v42 = vld [vmem:[#allocation7 + $0x20] sm:$0xff]  ;;  %v67_v47 = vld [vmem:[#allocation7 + $0x18] sm:$0xff]  ;;  %v66_v55 = vld [vmem:[#allocation7 + $0x10] sm:$0xff] }
  0x14   :  { %v1018_v21 = vsub.f32 %v74_v8, %v996_v11  ;;  %83 = vmatpush.msra.mxu0 %v988_v4  ;;  %v1022_v22 = vand.u32 4294901760, %v1000_v14  ;;  %v1025_v23 = vand.u32 4294901760, %v1003_v15  ;;  %224 = vmatpush.msra.mxu2 %v1000_v14  ;;  %v1036_v28 = vand.u32 4294901760, %v71_v18  ;;  %v65_v60 = vld [vmem:[#allocation7 + $0x8] sm:$0xff]  ;;  %v64_v1 = vld [vmem:[#allocation7] sm:$0xff]  ;;  %v1140_v7 = vld [vmem:[#allocation2] sm:$0xff] }
  0x15   :  { %v1028_v24 = vand.u32 4294901760, %v1006_v16  ;;  %v1034_v27 = vand.u32 4294901760, %v1012_v19  ;;  %v1039_v29 = vsub.f32 %v73_v12, %v1008_v17  ;;  %279 = vmatpush.msra.mxu3 %v988_v4  ;;  %v1050_v33 = vand.u32 4294901760, %v1015_v20  ;;  %1409 = vst [vmem:[#allocation18_spill] sm:$0xff] %v1140_v7 }
  0x16   :  { %85 = vmatpush.msra.mxu0 %v990_v5  ;;  %v124_v30 = vsub.f32 %v1000_v14, %v1022_v22  ;;  %v130_v31 = vsub.f32 %v1003_v15, %v1025_v23  ;;  %227 = vmatpush.msra.mxu2 %v1003_v15  ;;  %v1054_v34 = vand.u32 4294901760, %v1018_v21  ;;  %v1056_v35 = vand.u32 4294901760, %v70_v26 }
  0x17   :  { %v136_v32 = vsub.f32 %v1006_v16, %v1028_v24  ;;  %281 = vmatpush.msra.mxu3 %v990_v5  ;;  %v142_v39 = vsub.f32 %v1012_v19, %v1034_v27  ;;  %v1067_v40 = vsub.f32 %v72_v13, %v1030_v25  ;;  %v1071_v41 = vand.u32 4294901760, %v1039_v29 }
  0x18   :  { %v1059_v37 = vand.u32 4294901760, %v124_v30  ;;  %87 = vmatpush.msra.mxu0 %v992_v9  ;;  %v1062_v38 = vand.u32 4294901760, %v130_v31  ;;  %230 = vmatpush.msra.mxu2 %v1006_v16  ;;  %v148_v44 = vsub.f32 %v1015_v20, %v1050_v33  ;;  %v1080_v45 = vand.u32 4294901760, %v69_v36 }
  0x19   :  { %1403 = vst [vmem:[#allocation12_spill] sm:$0xff] %v1067_v40  ;;  %283 = vmatpush.msra.mxu3 %v992_v9  ;;  %v1076_v43 = vand.u32 4294901760, %v136_v32  ;;  %v1083_v46 = vsub.f32 %v71_v18, %v1036_v28  ;;  %v154_v48 = vsub.f32 %v1018_v21, %v1054_v34  ;;  %v1091_v49 = vand.u32 4294901760, %v142_v39 }
  0x1a   :  { %126 = vmatpush.msra.mxu1 %v1059_v37  ;;  %89 = vmatpush.msra.mxu0 %v994_v10  ;;  %v1094_v50 = vand.u32 4294901760, %v1067_v40  ;;  %v1096_v51 = vand.u32 4294901760, %v68_v42  ;;  %v1099_v52 = vsub.f32 %v70_v26, %v1056_v35  ;;  %v160_v53 = vsub.f32 %v1039_v29, %v1071_v41 }
  0x1b   :  { %1404 = vst [vmem:[#allocation13_spill] sm:$0xff] %v1083_v46  ;;  %233 = vmatpush.msra.mxu2 %v1012_v19  ;;  %285 = vmatpush.msra.mxu3 %v994_v10  ;;  %v1103_v54 = vand.u32 4294901760, %v67_v47  ;;  %v1109_v56 = vand.u32 4294901760, %v148_v44  ;;  %v1112_v57 = vand.u32 4294901760, %v1083_v46  ;;  %v1115_v58 = vsub.f32 %v69_v36, %v1080_v45 }
  0x1c   :  { %132 = vmatpush.msra.mxu1 %v1062_v38  ;;  %91 = vmatpush.msra.mxu0 %v996_v11  ;;  %1405 = vst [vmem:[#allocation14_spill] sm:$0xff] %v1099_v52  ;;  %v1117_v59 = vand.u32 4294901760, %v154_v48  ;;  %v166_v61 = vsub.f32 %v1067_v40, %v1094_v50  ;;  %v1126_v62 = vand.u32 4294901760, %v1099_v52  ;;  %v1128_v63 = vand.u32 4294901760, %v66_v55 }
  0x1d   :  { %236 = vmatpush.msra.mxu2 %v1015_v20  ;;  %287 = vmatpush.msra.mxu3 %v996_v11  ;;  %1406 = vst [vmem:[#allocation15_spill] sm:$0xff] %v1115_v58  ;;  %v1131_v0 = vsub.f32 %v68_v42, %v1096_v51  ;;  %v1133_v2 = vand.u32 4294901760, %v160_v53  ;;  %v1136_v6 = vsub.f32 %v67_v47, %v1103_v54  ;;  %v1147_v12 = vand.u32 4294901760, %v1115_v58 }
  0x1e   :  { %138 = vmatpush.msra.mxu1 %v1076_v43  ;;  %93 = vmatpush.msra.mxu0 %v1008_v17  ;;  %v172_v8 = vsub.f32 %v1083_v46, %v1112_v57  ;;  %v1149_v13 = vand.u32 4294901760, %v65_v60  ;;  %v1152_v18 = vand.u32 4294901760, %v1140_v7  ;;  %v1154_v26 = vand.u32 4294901760, %v64_v1 }
  0x1f   :  { %239 = vmatpush.msra.mxu2 %v1018_v21  ;;  %289 = vmatpush.msra.mxu3 %v1008_v17  ;;  %1407 = vst [vmem:[#allocation16_spill] sm:$0xff] %v1131_v0  ;;  %v1160_v30 = vand.u32 4294901760, %v166_v61  ;;  %v178_v31 = vsub.f32 %v1099_v52, %v1126_v62  ;;  %v1165_v32 = vand.u32 4294901760, %v1131_v0  ;;  %v1168_v36 = vsub.f32 %v66_v55, %v1128_v63 }
  0x20   :  { %144 = vmatpush.msra.mxu1 %v1091_v49  ;;  %95 = vmatpush.msra.mxu0 %v1030_v25  ;;  %1408 = vst [vmem:[#allocation17_spill] sm:$0xff] %v1136_v6  ;;  %v1171_v39 = vand.u32 4294901760, %v1136_v6  ;;  %v1177_v42 = vand.u32 4294901760, %v172_v8  ;;  %v184_v44 = vsub.f32 %v1115_v58, %v1147_v12  ;;  %v1182_v47 = vsub.f32 %v65_v60, %v1149_v13 }
  0x21   :  { %242 = vmatpush.msra.mxu2 %v1039_v29  ;;  %291 = vmatpush.msra.mxu3 %v1030_v25  ;;  %1410 = vst [vmem:[#allocation19_spill] sm:$0xff] %v1168_v36  ;;  %v113_v48 = vsub.f32 %v1140_v7, %v1152_v18  ;;  %v1190_v53 = vand.u32 4294901760, %v178_v31  ;;  %v190_v55 = vsub.f32 %v1131_v0, %v1165_v32  ;;  %v1195_v61 = vand.u32 4294901760, %v1168_v36 }
  0x22   :  { %150 = vmatpush.msra.mxu1 %v1109_v56  ;;  %97 = vmatpush.msra.mxu0 %v1036_v28  ;;  %v1198_v60 = vsub.f32 %v64_v1, %v1154_v26  ;;  %v1204_v8 = vand.u32 4294901760, %v184_v44  ;;  %v196_v31 = vsub.f32 %v1136_v6, %v1171_v39  ;;  %v1209_v7 = vand.u32 4294901760, %v1182_v47 }
  0x23   :  { %245 = vmatpush.msra.mxu2 %v1067_v40  ;;  %293 = vmatpush.msra.mxu3 %v1036_v28  ;;  %v1215_v1 = vand.u32 4294901760, %v190_v55  ;;  %v202_v44 = vsub.f32 %v1168_v36, %v1195_v61 }
  0x24   :  { %156 = vmatpush.msra.mxu1 %v1117_v59  ;;  %99 = vmatpush.msra.mxu0 %v1056_v35  ;;  %v208_v55 = vsub.f32 %v1182_v47, %v1209_v7 }
  0x25   :  { %248 = vmatpush.msra.mxu2 %v1083_v46  ;;  %295 = vmatpush.msra.mxu3 %v1056_v35 }
  0x26   :  { %162 = vmatpush.msra.mxu1 %v1133_v2  ;;  %101 = vmatpush.msra.mxu0 %v1080_v45 }
  0x27   :  { %251 = vmatpush.msra.mxu2 %v1099_v52  ;;  %297 = vmatpush.msra.mxu3 %v1080_v45  ;;  %v114_v52 = vand.u32 4294901760, %v113_v48 }
  0x28   :  { %168 = vmatpush.msra.mxu1 %v1160_v30  ;;  %103 = vmatpush.msra.mxu0 %v1096_v51 }
  0x29   :  { %254 = vmatpush.msra.mxu2 %v1115_v58  ;;  %299 = vmatpush.msra.mxu3 %v1096_v51  ;;  %v1220_v58 = vand.u32 4294901760, %v1198_v60  ;;  %v115_v46 = vsub.f32 %v113_v48, %v114_v52 }
  0x2a   :  { %174 = vmatpush.msra.mxu1 %v1177_v42  ;;  %105 = vmatpush.msra.mxu0 %v1103_v54 }
  0x2b   :  { %257 = vmatpush.msra.mxu2 %v1131_v0  ;;  %301 = vmatpush.msra.mxu3 %v1103_v54  ;;  %v1226_v0 = vand.u32 4294901760, %v196_v31  ;;  %v214_v40 = vsub.f32 %v1198_v60, %v1220_v58  ;;  %v1241_v31 = vand.u32 4294901760, %v208_v55 }
  0x2c   :  { %180 = vmatpush.msra.mxu1 %v1190_v53  ;;  %107 = vmatpush.msra.mxu0 %v1128_v63 }
  0x2d   :  { %260 = vmatpush.msra.mxu2 %v1136_v6  ;;  %303 = vmatpush.msra.mxu3 %v1128_v63  ;;  %v1234_v6 = vand.u32 4294901760, %v202_v44  ;;  %v1247_v44 = vand.u32 4294901760, %v214_v40 }
  0x2e   :  { %186 = vmatpush.msra.mxu1 %v1204_v8  ;;  %109 = vmatpush.msra.mxu0 %v1149_v13 }
  0x2f   :  { %263 = vmatpush.msra.mxu2 %v1168_v36  ;;  %305 = vmatpush.msra.mxu3 %v1149_v13  ;;  %v116_v36 = vand.u32 4294901760, %v115_v46 }
  0x30   :  { %192 = vmatpush.msra.mxu1 %v1215_v1  ;;  %111 = vmatpush.msra.mxu0 %v1154_v26 }
  0x31   :  { %266 = vmatpush.msra.mxu2 %v1182_v47  ;;  %307 = vmatpush.msra.mxu3 %v1154_v26 }
  0x32   :  { %318 = vmatpush.msrb.mxu0 %v1022_v22  ;;  %198 = vmatpush.msra.mxu1 %v1226_v0 }
  0x33   :  { %269 = vmatpush.msra.mxu2 %v1198_v60  ;;  %311 = vmatmul.f32.vlgmr.msra.gmra.mxu3 %v114_v52 }
  0x34   :  { %322 = vmatpush.msrb.mxu0 %v1025_v23  ;;  %204 = vmatpush.msra.mxu1 %v1234_v6 }
  0x35   :  { %272 = vmatmul.f32.vlgmr.msra.gmra.mxu2 %v113_v48  ;;  %117 = vmatmul.f32.vlgmr.msra.gmra.mxu0 %v116_v36 }
  0x36   :  { %326 = vmatpush.msrb.mxu0 %v1028_v24  ;;  %210 = vmatpush.msra.mxu1 %v1241_v31 }
  0x37   :  { %470 = vmatpush.msrb.mxu3 %v1059_v37  ;;  %425 = vmatpush.msrb.mxu2 %v986_v3 }
  0x38   :  { %330 = vmatpush.msrb.mxu0 %v1034_v27  ;;  %216 = vmatpush.msra.mxu1 %v1247_v44 }
  0x39   :  { %218 = vmatmul.f32.vlgmr.msra.gmra.mxu1 %v1152_v18  ;;  %476 = vmatpush.msrb.mxu3 %v1062_v38 }
  0x3a   :  { %385 = vmatpush.msrb.mxu1 %v986_v3  ;;  %334 = vmatpush.msrb.mxu0 %v1050_v33 }
  0x3b   :  { %482 = vmatpush.msrb.mxu3 %v1076_v43  ;;  %427 = vmatpush.msrb.mxu2 %v988_v4 }
  0x3c   :  { %387 = vmatpush.msrb.mxu1 %v988_v4  ;;  %338 = vmatpush.msrb.mxu0 %v1054_v34 }
  0x3d   :  { %488 = vmatpush.msrb.mxu3 %v1091_v49  ;;  %429 = vmatpush.msrb.mxu2 %v990_v5 }
  0x3e   :  { %389 = vmatpush.msrb.mxu1 %v990_v5  ;;  %342 = vmatpush.msrb.mxu0 %v1071_v41 }
  0x3f   :  { %494 = vmatpush.msrb.mxu3 %v1109_v56  ;;  %431 = vmatpush.msrb.mxu2 %v992_v9 }
  0x40   :  { %391 = vmatpush.msrb.mxu1 %v992_v9  ;;  %346 = vmatpush.msrb.mxu0 %v1094_v50 }
  0x41   :  { %500 = vmatpush.msrb.mxu3 %v1117_v59  ;;  %433 = vmatpush.msrb.mxu2 %v994_v10 }
  0x42   :  { %393 = vmatpush.msrb.mxu1 %v994_v10  ;;  %350 = vmatpush.msrb.mxu0 %v1112_v57 }
  0x43   :  { %506 = vmatpush.msrb.mxu3 %v1133_v2  ;;  %435 = vmatpush.msrb.mxu2 %v996_v11 }
  0x44   :  { %395 = vmatpush.msrb.mxu1 %v996_v11  ;;  %354 = vmatpush.msrb.mxu0 %v1126_v62 }
  0x45   :  { %512 = vmatpush.msrb.mxu3 %v1160_v30  ;;  %437 = vmatpush.msrb.mxu2 %v1008_v17 }
  0x46   :  { %397 = vmatpush.msrb.mxu1 %v1008_v17  ;;  %358 = vmatpush.msrb.mxu0 %v1147_v12 }
  0x47   :  { %518 = vmatpush.msrb.mxu3 %v1177_v42  ;;  %439 = vmatpush.msrb.mxu2 %v1030_v25 }
  0x48   :  { %399 = vmatpush.msrb.mxu1 %v1030_v25  ;;  %362 = vmatpush.msrb.mxu0 %v1165_v32 }
  0x49   :  { %524 = vmatpush.msrb.mxu3 %v1190_v53  ;;  %441 = vmatpush.msrb.mxu2 %v1036_v28 }
  0x4a   :  { %401 = vmatpush.msrb.mxu1 %v1036_v28  ;;  %366 = vmatpush.msrb.mxu0 %v1171_v39 }
  0x4b   :  { %530 = vmatpush.msrb.mxu3 %v1204_v8  ;;  %443 = vmatpush.msrb.mxu2 %v1056_v35  ;;  %v833_v8 = vld [vmem:[#allocation5] ss:$0 sm:$0xff] }
  0x4c   :  { %403 = vmatpush.msrb.mxu1 %v1056_v35  ;;  %370 = vmatpush.msrb.mxu0 %v1195_v61 }
  0x4d   :  { %536 = vmatpush.msrb.mxu3 %v1215_v1  ;;  %445 = vmatpush.msrb.mxu2 %v1080_v45 }
  0x4e   :  { %405 = vmatpush.msrb.mxu1 %v1080_v45  ;;  %374 = vmatpush.msrb.mxu0 %v1209_v7 }
  0x4f   :  { %542 = vmatpush.msrb.mxu3 %v1226_v0  ;;  %447 = vmatpush.msrb.mxu2 %v1096_v51 }
  0x50   :  { %407 = vmatpush.msrb.mxu1 %v1096_v51  ;;  %378 = vmatpush.msrb.mxu0 %v1220_v58 }
  0x51   :  { %380 = vmatmul.f32.vlgmr.msrb.gmra.mxu0 %v1152_v18  ;;  %548 = vmatpush.msrb.mxu3 %v1234_v6 }
  0x52   :  { %409 = vmatpush.msrb.mxu1 %v1103_v54  ;;  %568 = vmatpush.msra.mxu0 %v1000_v14  ;;  %v1417_v14 = vld [vmem:[#allocation19_spill] sm:$0xff] }
  0x53   :  { %554 = vmatpush.msrb.mxu3 %v1241_v31  ;;  %449 = vmatpush.msrb.mxu2 %v1103_v54  ;;  %v834_v31 = vld [vmem:[%s1392_s2] ss:$0 sm:$0xff] }
  0x54   :  { %411 = vmatpush.msrb.mxu1 %v1128_v63  ;;  %571 = vmatpush.msra.mxu0 %v1003_v15 }
  0x55   :  { %560 = vmatpush.msrb.mxu3 %v1247_v44  ;;  %451 = vmatpush.msrb.mxu2 %v1128_v63 }
  0x56   :  { %413 = vmatpush.msrb.mxu1 %v1149_v13  ;;  %574 = vmatpush.msra.mxu0 %v1006_v16 }
  0x57   :  { %729 = vmatpush.msra.mxu3 %v986_v3  ;;  %453 = vmatpush.msrb.mxu2 %v1149_v13 }
  0x58   :  { %415 = vmatpush.msrb.mxu1 %v1154_v26  ;;  %577 = vmatpush.msra.mxu0 %v1012_v19 }
  0x59   :  { %417 = vmatmul.f32.vlgmr.msrb.gmra.mxu1 %v1152_v18  ;;  %731 = vmatpush.msra.mxu3 %v988_v4 }
  0x5a   :  { %621 = vmatpush.msra.mxu1 %v986_v3  ;;  %580 = vmatpush.msra.mxu0 %v1015_v20  ;;  %v1411_v3 = vld [vmem:[#allocation12_spill] sm:$0xff] }
  0x5b   :  { %733 = vmatpush.msra.mxu3 %v990_v5  ;;  %455 = vmatpush.msrb.mxu2 %v1154_v26 }
  0x5c   :  { %623 = vmatpush.msra.mxu1 %v988_v4  ;;  %583 = vmatpush.msra.mxu0 %v1018_v21  ;;  %v1412_v4 = vld [vmem:[#allocation13_spill] sm:$0xff] }
  0x5d   :  { %735 = vmatpush.msra.mxu3 %v992_v9  ;;  %662 = vmatpush.msra.mxu2 %v1022_v22 }
  0x5e   :  { %625 = vmatpush.msra.mxu1 %v990_v5  ;;  %586 = vmatpush.msra.mxu0 %v1039_v29  ;;  %v1413_v5 = vld [vmem:[#allocation14_spill] sm:$0xff] }
  0x5f   :  { %737 = vmatpush.msra.mxu3 %v994_v10  ;;  %666 = vmatpush.msra.mxu2 %v1025_v23  ;;  %v1418_v29 = vld [vmem:[#allocation18_spill] sm:$0xff] }
  0x60   :  { %627 = vmatpush.msra.mxu1 %v992_v9  ;;  %589 = vmatpush.msra.mxu0 %v1411_v3  ;;  %v1414_v9 = vld [vmem:[#allocation15_spill] sm:$0xff] }
  0x61   :  { %739 = vmatpush.msra.mxu3 %v996_v11  ;;  %670 = vmatpush.msra.mxu2 %v1028_v24 }
  0x62   :  { %629 = vmatpush.msra.mxu1 %v994_v10  ;;  %592 = vmatpush.msra.mxu0 %v1412_v4  ;;  %v1415_v10 = vld [vmem:[#allocation16_spill] sm:$0xff] }
  0x63   :  { %741 = vmatpush.msra.mxu3 %v1008_v17  ;;  %674 = vmatpush.msra.mxu2 %v1034_v27 }
  0x64   :  { %631 = vmatpush.msra.mxu1 %v996_v11  ;;  %595 = vmatpush.msra.mxu0 %v1413_v5  ;;  %v1416_v11 = vld [vmem:[#allocation17_spill] sm:$0xff] }
  0x65   :  { %743 = vmatpush.msra.mxu3 %v1030_v25  ;;  %678 = vmatpush.msra.mxu2 %v1050_v33 }
  0x66   :  { %633 = vmatpush.msra.mxu1 %v1008_v17  ;;  %598 = vmatpush.msra.mxu0 %v1414_v9 }
  0x67   :  { %745 = vmatpush.msra.mxu3 %v1036_v28  ;;  %682 = vmatpush.msra.mxu2 %v1054_v34 }
  0x68   :  { %635 = vmatpush.msra.mxu1 %v1030_v25  ;;  %601 = vmatpush.msra.mxu0 %v1415_v10 }
  0x69   :  { %747 = vmatpush.msra.mxu3 %v1056_v35  ;;  %686 = vmatpush.msra.mxu2 %v1071_v41 }
  0x6a   :  { %637 = vmatpush.msra.mxu1 %v1036_v28  ;;  %604 = vmatpush.msra.mxu0 %v1416_v11 }
  0x6b   :  { %749 = vmatpush.msra.mxu3 %v1080_v45  ;;  %690 = vmatpush.msra.mxu2 %v1094_v50 }
  0x6c   :  { %639 = vmatpush.msra.mxu1 %v1056_v35  ;;  %607 = vmatpush.msra.mxu0 %v1417_v14 }
  0x6d   :  { %751 = vmatpush.msra.mxu3 %v1096_v51  ;;  %694 = vmatpush.msra.mxu2 %v1112_v57 }
  0x6e   :  { %641 = vmatpush.msra.mxu1 %v1080_v45  ;;  %610 = vmatpush.msra.mxu0 %v1182_v47 }
  0x6f   :  { %753 = vmatpush.msra.mxu3 %v1103_v54  ;;  %698 = vmatpush.msra.mxu2 %v1126_v62 }
  0x70   :  { %643 = vmatpush.msra.mxu1 %v1096_v51  ;;  %613 = vmatpush.msra.mxu0 %v1198_v60 }
  0x71   :  { %755 = vmatpush.msra.mxu3 %v1128_v63  ;;  %702 = vmatpush.msra.mxu2 %v1147_v12 }
  0x72   :  { %645 = vmatpush.msra.mxu1 %v1103_v54 }
  0x73   :  { %757 = vmatpush.msra.mxu3 %v1149_v13  ;;  %706 = vmatpush.msra.mxu2 %v1165_v32 }
  0x74   :  { %647 = vmatpush.msra.mxu1 %v1128_v63 }
  0x75   :  { %759 = vmatpush.msra.mxu3 %v1154_v26  ;;  %710 = vmatpush.msra.mxu2 %v1171_v39 }
  0x76   :  { %649 = vmatpush.msra.mxu1 %v1149_v13 }
  0x77   :  { %714 = vmatpush.msra.mxu2 %v1195_v61 }
  0x78   :  { %651 = vmatpush.msra.mxu1 %v1154_v26 }
  0x79   :  { %718 = vmatpush.msra.mxu2 %v1209_v7 }
  0x7b   :  { %722 = vmatpush.msra.mxu2 %v1220_v58 }
  0xb2   :  { %v118_v16 = vpop.f32.mrf.mxu0 }
  0xb6   :  { %v219_v15 = vpop.f32.mrf.mxu1  ;;  %v312_v21 = vpop.f32.mrf.mxu3 }
  0xb7   :  { %v220_v17 = vadd.f32 %v219_v15, %v118_v16 }
  0xb8   :  { %v273_v19 = vpop.f32.mrf.mxu2 }
  0xb9   :  { %v274_v20 = vadd.f32 %v273_v19, %v220_v17 }
  0xbb   :  { %v313_v22 = vadd.f32 %v312_v21, %v274_v20 }
  0xce   :  { %v381_v23 = vpop.f32.mrf.mxu0 }
  0xcf   :  { %v382_v24 = vadd.f32 %v381_v23, %v313_v22 }
  0xd6   :  { %v418_v25 = vpop.f32.mrf.mxu1 }
  0xd7   :  { %v419_v27 = vadd.f32 %v418_v25, %v382_v24 }
  0xd9   :  { %v421_v28 = vmul.f32 0.03125, %v419_v27 }
  0xdb   :  { %v422_v33 = vsub.f32 %v1418_v29, %v421_v28 }
  0xdd   :  { %v423_v34 = vmul.f32 %v422_v33, %v422_v33 }
  0xdf   :  { %v456_v35 = vand.u32 4294901760, %v423_v34 }
  0xe1   :  { %v457_v37 = vsub.f32 %v423_v34, %v456_v35  ;;  %562 = vmatmul.f32.vlgmr.msrb.gmra.mxu3 %v456_v35 }
  0xe3   :  { %616 = vmatmul.f32.vlgmr.msra.gmra.mxu0 %v457_v37  ;;  %v458_v38 = vand.u32 4294901760, %v457_v37 }
  0xe5   :  { %655 = vmatmul.f32.vlgmr.msra.gmra.mxu1 %v458_v38  ;;  %v459_v40 = vsub.f32 %v457_v37, %v458_v38 }
  0xe7   :  { %v460_v41 = vand.u32 4294901760, %v459_v40 }
  0xe9   :  { %461 = vmatmul.f32.vlgmr.msrb.gmra.mxu2 %v460_v41  ;;  %761 = vmatmul.f32.vlgmr.msra.gmra.mxu3 %v456_v35 }
  0xf1   :  { %724 = vmatmul.f32.vlgmr.msra.gmra.mxu2 %v456_v35 }
 0x160   :  { %v617_v49 = vpop.f32.mrf.mxu0 }
 0x162   :  { %v656_v51 = vpop.f32.mrf.mxu1 }
 0x164   :  { %v563_v43 = vpop.f32.mrf.mxu3 }
 0x16c   :  { %v462_v45 = vpop.f32.mrf.mxu2  ;;  %v762_v57 = vpop.f32.mrf.mxu3 }
 0x16d   :  { %v564_v46 = vadd.f32 %v563_v43, %v462_v45 }
 0x16f   :  { %v618_v50 = vadd.f32 %v617_v49, %v564_v46 }
 0x171   :  { %v657_v52 = vadd.f32 %v656_v51, %v618_v50 }
 0x174   :  { %v725_v54 = vpop.f32.mrf.mxu2 }
 0x175   :  { %v726_v56 = vadd.f32 %v725_v54, %v657_v52 }
 0x177   :  { %v763_v58 = vadd.f32 %v762_v57, %v726_v56 }
 0x179   :  { %v765_v59 = vmul.f32 0.032258064, %v763_v58 }
 0x17b   :  { %835 = vrsqrt.f32 %v765_v59  ;;  %vm773_vm0 = vcmp.eq.f32.partialorder %v765_v59, inf  ;;  %v776_v13 = vand.u32 2147483648, %v765_v59  ;;  %vm775_vm1 = vcmp.eq.f32.partialorder %v765_v59, 0.0 }
 0x181   :  { %v836_v62 = vpop.eup %835 }
 0x182   :  { %v767_v63 = vmul.f32 %v836_v62, %v765_v59 }
 0x184   :  { %v768_v0 = vmul.f32 %v836_v62, %v767_v63 }
 0x186   :  { %v769_v2 = vmul.f32 0.5, %v768_v0 }
 0x188   :  { %v770_v6 = vsub.f32 1.5, %v769_v2 }
 0x18a   :  { %v771_v7 = vmul.f32 %v836_v62, %v770_v6 }
 0x18c   :  { %v772_v12 = vmul.f32 %v771_v7, %v765_v59 }
 0x18e   :  { %v774_v18 = vsel %vm773_vm0, %v765_v59, %v772_v12 }
 0x18f   :  { %v777_v26 = vsel %vm775_vm1, %v776_v13, %v774_v18 }
 0x190   :  { %v778_v30 = vadd.f32 1e-06, %v777_v26 }
 0x192   :  { %837 = vrcp.f32 %v778_v30  ;;  %v790_v42 = vand.u32 2147483648, %v778_v30  ;;  %v788_v48 = vand.u32 2147483647, %v778_v30  ;;  %vm784_vm3 = vweird.f32 %v778_v30 }
 0x194   :  { %v791_v61 = vor.u32 1.1754944e-38, %v790_v42  ;;  %vm789_vm5 = vcmp.eq.f32.partialorder %v788_v48, 8.507059e+37 }
 0x198   :  { %v838_v32 = vpop.eup %837 }
 0x199   :  { %v780_v36 = vmul.f32 %v838_v32, %v778_v30  ;;  %vm785_vm2 = vweird.f32 %v838_v32 }
 0x19a   :  { %vm786_vm4 = vmor %vm784_vm3, %vm785_vm2 }
 0x19b   :  { %v781_v39 = vsub.f32 1.0, %v780_v36 }
 0x19d   :  { %v782_v47 = vmul.f32 %v838_v32, %v781_v39 }
 0x19f   :  { %v783_v53 = vadd.f32 %v838_v32, %v782_v47 }
 0x1a1   :  { %v787_v60 = vsel %vm786_vm4, %v838_v32, %v783_v53 }
 0x1a2   :  { %v792_v1 = vsel %vm789_vm5, %v791_v61, %v787_v60 }
 0x1a3   :  { %v794_v55 = vmul.f32 %v792_v1, %v422_v33 }
 0x1a5   :  { %v798_v44 = vmul.f32 %v833_v8, %v794_v55 }
 0x1a7   :  { %v803_v3 = vadd.f32 %v834_v31, %v798_v44 }
 0x1a9   :  { %804 = vst [vmem:[#allocation8] sm:$0xff] %v803_v3 }
 0x1aa   :  { %808 = vsyncadd [#allocation4], 64  ;;  %s811_s9 = sshll.u32 %s1394_s4, 4  ;;  %s948_s10 = smov [#allocation8]   ;;  %s812_s9 = int_to_ptr.hbm [resolvable:$true] %s811_s9 }
 0x1ab   :  { %s809_s11 = sshll.u32 %s948_s10, 4  ;;  %s810_s11 = int_to_ptr.vmem [resolvable:$true] %s809_s11 }
 0x1ac   :  { %817 = dma.vmem_to_hbm [thread:$0]  %s810_s11, 64, %s812_s9, [#allocation4], %s943_s25, %s943_s25, %s944_s26  }
 0x1ad   :  { %939 = dma.done.wait [#allocation4], 128  }
 0x1ae   :  { %940 = vsyncadd [#allocation4], 4294967168 }
 0x1af   :  { %822 = vsyncpa [#allocation3], 1 }
 0x1b0   :  { %823 = vsyncpa [#allocation6], 1 }
 0x1b1   :  { %824 = vsyncpa [#allocation4], 1 }

</bundles_post_ra>
